<compile_context>
chip_gen: v7x
topology: tpu7x:2x2x1
jax: 0.10.0
libtpu: 0.0.40
codegen_flags: <defaults>
</compile_context>

<pallas_src>
import jax
import jax.numpy as jnp
from jax.experimental import pallas as pl
from jax.experimental.pallas import tpu as pltpu


def _round_up(x: int, m: int) -> int:
    return ((x + m - 1) // m) * m


def _make_linear_t_kernel(in_features: int, use_vpu: bool):
    """Kernel computing y^T = W @ x^T + b for one lane-dense batch tile."""

    def kernel(xt_ref, w_ref, b_ref, o_ref):
        out, tb = o_ref.shape  # (OUT, batch_tile) -- static

        # Hoisted bias broadcast (once per tile, not per FMA).
        y = jnp.broadcast_to(b_ref[...].astype(jnp.float32), (out, tb))

        if use_vpu:
            # Tiny contraction: unrolled VPU FMAs over full-width vregs.
            # [OUT, 1] * [1, tb] broadcasts -> [OUT, tb]; no MXU fill/drain.
            for k in range(in_features):
                w_col = w_ref[:, k:k + 1].astype(jnp.float32)    # [OUT, 1]
                x_row = xt_ref[k:k + 1, :].astype(jnp.float32)   # [1, tb]
                y = y + w_col * x_row
        else:
            # Larger contraction: MXU dot, lane-dense output (B on lanes).
            y = y + jnp.dot(w_ref[...], xt_ref[...],
                            preferred_element_type=jnp.float32)

        o_ref[...] = y.astype(o_ref.dtype)

    return kernel


def linear_forward(x, weight, bias, *, block_b: int = 32768, use_pallas=None):
    """x: [B, IN], weight: [OUT, IN] (PyTorch layout), bias: [OUT] -> [B, OUT]."""
    B, IN = x.shape
    OUT = weight.shape[0]

    # Regime gate: for tiny batches the problem is 100% custom-call overhead;
    # let XLA fuse the linear instead.  use_pallas=True forces the kernel path.
    if use_pallas is None:
        use_pallas = B >= 4096
    if not use_pallas:
        return x @ weight.T + bias

    # Lane-dense layout prep in XLA (fuses with surrounding graph):
    #   x^T: [IN, B]  (batch -> lanes),  bias: [OUT, 1].
    xt = x.T
    bias2d = bias.reshape(OUT, 1)

    # Batch tile: multiple of 128 lanes, capped by block_b.  Pad B up to a
    # multiple of the tile (zero columns contribute nothing we keep).
    tb = min(block_b, _round_up(B, 128))
    tb = _round_up(tb, 128)
    b_pad = _round_up(B, tb)
    if b_pad != B:
        xt = jnp.pad(xt, ((0, 0), (0, b_pad - B)))
    grid = (b_pad // tb,)

    use_vpu = IN <= 32  # raised VPU/MXU crossover (K << 128 wastes the MXU)

    cost = pl.CostEstimate(
        flops=2 * B * IN * OUT,
        transcendentals=0,
        bytes_accessed=4 * (B * IN + IN * OUT + OUT + B * OUT),
    )

    yt = pl.pallas_call(
        _make_linear_t_kernel(IN, use_vpu),
        out_shape=jax.ShapeDtypeStruct((OUT, b_pad), x.dtype),
        grid=grid,
        in_specs=[
            pl.BlockSpec((IN, tb), lambda i: (0, i)),     # x^T tile (lane-dense)
            pl.BlockSpec((OUT, IN), lambda i: (0, 0)),    # W (resident, tiny)
            pl.BlockSpec((OUT, 1), lambda i: (0, 0)),     # bias column (resident)
        ],
        out_specs=pl.BlockSpec((OUT, tb), lambda i: (0, i)),  # y^T tile (lane-dense)
        compiler_params=pltpu.CompilerParams(
            dimension_semantics=("parallel",),            # multi-step grid -> both v7x TCs
        ),
        cost_estimate=cost,
    )(xt, weight, bias2d)

    # Back to the caller's [B, OUT] layout (cheap XLA transpose + slice, fuses).
    return yt[:, :B].T


def init_params(key, in_features=4, out_features=5, dtype=jnp.float32):
    # Deterministic init mimicking nn.Linear's uniform(-1/sqrt(in), 1/sqrt(in)).
    kw, kb = jax.random.split(key)
    bound = 1.0 / (in_features ** 0.5)
    weight = jax.random.uniform(
        kw, (out_features, in_features), dtype, minval=-bound, maxval=bound)
    bias = jax.random.uniform(
        kb, (out_features,), dtype, minval=-bound, maxval=bound)
    return weight, bias


if __name__ == "__main__":
    key = jax.random.PRNGKey(0)
    k_x, k_x2, k_p = jax.random.split(key, 3)

    B, IN, OUT = 2, 4, 5
    weight, bias = init_params(k_p, IN, OUT)

    # Small shape from the module spec (B=2): force the Pallas path to exercise it.
    x = jax.random.normal(k_x, (B, IN), dtype=jnp.float32)
    out = linear_forward(x, weight, bias, use_pallas=True)
    out = jax.block_until_ready(out)
    ref = x @ weight.T + bias
    assert out.shape == (B, OUT)
    assert jnp.allclose(out, ref, atol=1e-5, rtol=1e-5)

    # Extra check: non-multiple-of-128 batch exercises the cdiv + padding path.
    x2 = jax.random.normal(k_x2, (300, IN), dtype=jnp.float32)
    out2 = jax.block_until_ready(linear_forward(x2, weight, bias, use_pallas=True))
    ref2 = x2 @ weight.T + bias
    assert out2.shape == (300, OUT)
    assert jnp.allclose(out2, ref2, atol=1e-5, rtol=1e-5)

    print("KERNEL_OK")
</pallas_src>

<mosaic_0001>
module attributes {stable_mosaic.version = 11 : i64} {
  func.func @kernel(%arg0: i32, %arg1: memref<4x128xf32, #tpu.memory_space<vmem>>, %arg2: memref<5x4xf32, #tpu.memory_space<vmem>>, %arg3: memref<5x1xf32, #tpu.memory_space<vmem>>, %arg4: memref<5x128xf32, #tpu.memory_space<vmem>>) attributes {dimension_semantics = [#tpu.dimension_semantics<parallel>], iteration_bounds = array<i64: 1>, scalar_prefetch = 0 : i64, scratch_operands = 0 : i64, tpu.core_type = #tpu.core_type<tc>, window_params = [{transform_indices = @transform_0, window_bounds = array<i64: 4, 128>}, {pipeline_mode = #tpu.pipeline_mode<synchronous>, transform_indices = @transform_1, window_bounds = array<i64: 5, 4>}, {pipeline_mode = #tpu.pipeline_mode<synchronous>, transform_indices = @transform_2, window_bounds = array<i64: 5, 1>}, {transform_indices = @transform_3, window_bounds = array<i64: 5, 128>}]} {
    %c0 = arith.constant 0 : index
    %c0_0 = arith.constant 0 : index
    %0 = vector.load %arg3[%c0, %c0_0] : memref<5x1xf32, #tpu.memory_space<vmem>>, vector<5x1xf32>
    %1 = vector.shape_cast %0 : vector<5x1xf32> to vector<5x1xf32>
    %2 = vector.broadcast %1 : vector<5x1xf32> to vector<5x128xf32>
    %c0_1 = arith.constant 0 : index
    %c0_2 = arith.constant 0 : index
    %3 = vector.load %arg2[%c0_1, %c0_2] : memref<5x4xf32, #tpu.memory_space<vmem>>, vector<5x1xf32>
    %c0_3 = arith.constant 0 : index
    %c0_4 = arith.constant 0 : index
    %4 = vector.load %arg1[%c0_3, %c0_4] : memref<4x128xf32, #tpu.memory_space<vmem>>, vector<1x128xf32>
    %5 = vector.broadcast %3 : vector<5x1xf32> to vector<5x128xf32>
    %6 = vector.broadcast %4 : vector<1x128xf32> to vector<5x128xf32>
    %7 = arith.mulf %5, %6 : vector<5x128xf32>
    %8 = arith.addf %2, %7 : vector<5x128xf32>
    %c0_5 = arith.constant 0 : index
    %c1 = arith.constant 1 : index
    %9 = vector.load %arg2[%c0_5, %c1] : memref<5x4xf32, #tpu.memory_space<vmem>>, vector<5x1xf32>
    %c1_6 = arith.constant 1 : index
    %c0_7 = arith.constant 0 : index
    %10 = vector.load %arg1[%c1_6, %c0_7] : memref<4x128xf32, #tpu.memory_space<vmem>>, vector<1x128xf32>
    %11 = vector.broadcast %9 : vector<5x1xf32> to vector<5x128xf32>
    %12 = vector.broadcast %10 : vector<1x128xf32> to vector<5x128xf32>
    %13 = arith.mulf %11, %12 : vector<5x128xf32>
    %14 = arith.addf %8, %13 : vector<5x128xf32>
    %c0_8 = arith.constant 0 : index
    %c2 = arith.constant 2 : index
    %15 = vector.load %arg2[%c0_8, %c2] : memref<5x4xf32, #tpu.memory_space<vmem>>, vector<5x1xf32>
    %c2_9 = arith.constant 2 : index
    %c0_10 = arith.constant 0 : index
    %16 = vector.load %arg1[%c2_9, %c0_10] : memref<4x128xf32, #tpu.memory_space<vmem>>, vector<1x128xf32>
    %17 = vector.broadcast %15 : vector<5x1xf32> to vector<5x128xf32>
    %18 = vector.broadcast %16 : vector<1x128xf32> to vector<5x128xf32>
    %19 = arith.mulf %17, %18 : vector<5x128xf32>
    %20 = arith.addf %14, %19 : vector<5x128xf32>
    %c0_11 = arith.constant 0 : index
    %c3 = arith.constant 3 : index
    %21 = vector.load %arg2[%c0_11, %c3] : memref<5x4xf32, #tpu.memory_space<vmem>>, vector<5x1xf32>
    %c3_12 = arith.constant 3 : index
    %c0_13 = arith.constant 0 : index
    %22 = vector.load %arg1[%c3_12, %c0_13] : memref<4x128xf32, #tpu.memory_space<vmem>>, vector<1x128xf32>
    %23 = vector.broadcast %21 : vector<5x1xf32> to vector<5x128xf32>
    %24 = vector.broadcast %22 : vector<1x128xf32> to vector<5x128xf32>
    %25 = arith.mulf %23, %24 : vector<5x128xf32>
    %26 = arith.addf %20, %25 : vector<5x128xf32>
    %c0_14 = arith.constant 0 : index
    %c0_15 = arith.constant 0 : index
    %27 = vector.load %arg4[%c0_14, %c0_15] : memref<5x128xf32, #tpu.memory_space<vmem>>, vector<5x128xf32>
    tpu.vector_store %arg4[%c0_14, %c0_15], %26 {strides = array<i32>} : memref<5x128xf32, #tpu.memory_space<vmem>>, vector<5x128xf32>,
    return
  }
  func.func @transform_0(%arg0: i32) -> (i32, i32) {
    %c0_i32 = arith.constant 0 : i32
    %c0_i32_0 = arith.constant 0 : i32
    return %c0_i32, %arg0 : i32, i32
  }
  func.func @transform_1(%arg0: i32) -> (i32, i32) {
    %c0_i32 = arith.constant 0 : i32
    %c0_i32_0 = arith.constant 0 : i32
    %c0_i32_1 = arith.constant 0 : i32
    return %c0_i32, %c0_i32_0 : i32, i32
  }
  func.func @transform_2(%arg0: i32) -> (i32, i32) {
    %c0_i32 = arith.constant 0 : i32
    %c0_i32_0 = arith.constant 0 : i32
    %c0_i32_1 = arith.constant 0 : i32
    return %c0_i32, %c0_i32_0 : i32, i32
  }
  func.func @transform_3(%arg0: i32) -> (i32, i32) {
    %c0_i32 = arith.constant 0 : i32
    %c0_i32_0 = arith.constant 0 : i32
    return %c0_i32, %arg0 : i32, i32
  }
}

</mosaic_0001>

<bundles_post_ra>
// kernel: tpu_custom_call.1
= control target key start
LH: loop header
LB: loop body
LE: loop exit
PB: predicated region body
PF: predicated region fallthrough
CT: control target
= control target key end

     0   :  { %v119_v1 = vmov 0   ;;  %v120_v2 = vmov 1   ;;  %s174_s0 = inlined_call_operand.vmem [shape: f32[4,128], index: 0, kind: input, shape index: {}]   ;;  %s175_s1 = inlined_call_operand.vmem [shape: f32[5,4], index: 1, kind: input, shape index: {}]   ;;  %s176_s2 = inlined_call_operand.vmem [shape: f32[5,1], index: 2, kind: input, shape index: {}]   ;;  %s177_s3 = inlined_call_operand.hbm [shape: f32[5,128], index: 3, kind: output, shape index: {}]  }
   0x1   :  { %v21_v0 = vld [vmem:[%s175_s1] sm:$0x1f]  ;;  %91 = vset.pattern.permute.xlu0 %v119_v1  ;;  %92 = vset.pattern.permute.xlu1 %v120_v2 }
   0x2   :  { %8 = vsyncpa [#allocation3], 0  ;;  %25 = vperm.xlu0 %91, %v21_v0   ;;  %36 = vperm.xlu1 %92, %v21_v0   ;;  %v15_v3 = vld [vmem:[%s176_s2] sm:$0x1f]  ;;  %v121_v4 = vmov 2   ;;  %v122_v5 = vmov 3  }
   0x3   :  { %v82_v6 = vld [vmem:[%s174_s0] ss:$0 sm:$0xff]  ;;  %v83_v9 = vld [vmem:[%s174_s0 + $0x1] ss:$0 sm:$0xff]  ;;  %v84_v11 = vld [vmem:[%s174_s0 + $0x2] ss:$0 sm:$0xff] }
   0x4   :  { %v85_v18 = vld [vmem:[%s174_s0 + $0x3] ss:$0 sm:$0xff]  ;;  %s123_s22 = smov [#allocation2]  }
   0x5   :  { %s74_s23 = sshll.u32 %s123_s22, 4  ;;  %s75_s23 = int_to_ptr.vmem [resolvable:$true] %s74_s23 }
   0x6   :  { %18 = vperm.xlu0 %91, %v15_v3   ;;  %93 = vset.pattern.permute.xlu1 %v121_v4  ;;  %s95_s24 = scalar_lea.vmem %s75_s23, 128  ;;  %p100_p1 = scmp.lt.s32.totalorder %s75_s23, %s75_s23 }
   0x7   :  { %47 = vperm.xlu1 %93, %v21_v0   ;;  %p96_p0 = scmp.ne.s32.totalorder %s75_s23, %s95_s24  ;;  %p101_p2 = scmp.lt.s32.totalorder %s95_s24, %s95_s24 }
   0x9   :  { %p102_p3 = por %p101_p2, %p100_p1 }
   0xa   :  { %94 = vset.pattern.permute.xlu0 %v122_v5 }
   0xb   :  { %58 = vperm.xlu0 %94, %v21_v0   ;;  %p103_p4 = pnand %p102_p3, %p96_p0 }
  0x81   :  { %v26_v7 = vpop.permute.xlu0 %25  ;;  %v37_v8 = vpop.permute.xlu1 %36 }
  0x82   :  { %v32_v10 = vmul.f32 %v82_v6, %v26_v7  ;;  %v43_v13 = vmul.f32 %v83_v9, %v37_v8 }
  0x85   :  { %v19_v12 = vpop.permute.xlu0 %18 }
  0x86   :  { %v33_v14 = vadd.f32 %v32_v10, %v19_v12  ;;  %v48_v15 = vpop.permute.xlu1 %47 }
  0x87   :  { %v54_v16 = vmul.f32 %v84_v11, %v48_v15 }
  0x88   :  { %v44_v17 = vadd.f32 %v43_v13, %v33_v14 }
  0x8a   :  { %v55_v19 = vadd.f32 %v54_v16, %v44_v17  ;;  %v59_v20 = vpop.permute.xlu0 %58 }
  0x8b   :  { %v65_v21 = vmul.f32 %v85_v18, %v59_v20 }
  0x8d   :  { %v66_v22 = vadd.f32 %v65_v21, %v55_v19 }
  0x8f   :  { %67 = vst [vmem:[#allocation2] sm:$0x1f] %v66_v22 }
  0x90   :  { %106 = shalt.err (!%p103_p4)
}
  0x91   :  { %s107_s27 = scalar_lea.hbm %s177_s3, 128 }
  0x92   :  { %p108_p5 = scmp.ne.s32.totalorder %s177_s3, %s107_s27  ;;  %p111_p6 = scmp.lt.u32.totalorder %s107_s27, %s177_s3 }
  0x94   :  { %p113_p7 = pnand %p111_p6, %p108_p5 }
  0x96   :  { %116 = shalt.err (!%p113_p7)
}
  0x97   :  { %77 = dma.vmem_to_hbm [thread:$0]  %s75_s23, 128, %s177_s3, [#allocation3]  }
  0x98   :  { %117 = dma.done.wait [#allocation3], 128  }
  0x99   :  { %118 = vsyncadd [#allocation3], 4294967168 }
  0x9a   :  { %81 = vsyncpa [#allocation3], 1 }

</bundles_post_ra>
